<compile_context>
chip_gen: v6e
topology: v6e:2x2x1
jax: 0.10.0
libtpu: 0.0.40
codegen_flags: <defaults>
</compile_context>

<pallas_src>
import jax
import jax.numpy as jnp
from jax import lax
from jax.experimental import pallas as pl
from jax.experimental.pallas import tpu as pltpu

_BN_EPS = 1e-5


# --------------------------- fused DoubleConv kernel ----------------------------
def _double_conv_kernel(x2_ref, x1_ref, w1a_ref, w1b_ref, b1_ref,
                        w2_ref, b2_ref, o_ref):
    # x2_ref:  (Bt, H+2, W*Cskip)   bf16  skip-path rows, per-image zero halo rows
    # x1_ref:  (Bt, H+2, W*Clow)    bf16  upsampled-path rows, per-image zero halo rows
    # w1a_ref: (3, W*Cskip, W*Cmid) bf16  banded conv1 weights for the x2 channel group
    # w1b_ref: (3, W*Clow,  W*Cmid) bf16  banded conv1 weights for the x1 channel group
    # b1_ref:  (1, W*Cmid)          f32   folded BN shift, tiled per spatial column
    # w2_ref:  (3, W*Cmid,  W*Cout) bf16  banded conv2 weights
    # b2_ref:  (1, W*Cout)          f32
    # o_ref:   (Bt*H, W*Cout)       f32   lane-dense output rows for this batch tile
    bt = x2_ref.shape[0]
    H = x2_ref.shape[1] - 2
    w_cmid = w2_ref.shape[1]

    def tap(src_ref, dy):
        # (Bt, H, W*C) -> (Bt*H, W*C); safe because each image carries its own halo rows.
        rows = src_ref[:, dy:dy + H, :]
        return rows.reshape(bt * H, rows.shape[2])

    # ---- layer 1: concat fused as two banded matmuls per dy tap, tap-by-tap accumulation
    acc = jnp.dot(tap(x2_ref, 0), w1a_ref[0], preferred_element_type=jnp.float32)
    acc = acc + jnp.dot(tap(x1_ref, 0), w1b_ref[0], preferred_element_type=jnp.float32)
    for dy in (1, 2):
        acc = acc + jnp.dot(tap(x2_ref, dy), w1a_ref[dy],
                            preferred_element_type=jnp.float32)
        acc = acc + jnp.dot(tap(x1_ref, dy), w1b_ref[dy],
                            preferred_element_type=jnp.float32)
    # Conv1 + folded-BN shift + ReLU; keep as bf16 (the MXU consumes it as bf16 anyway).
    h1 = jnp.maximum(acc + b1_ref[...], 0.0).astype(jnp.bfloat16)     # (Bt*H, W*Cmid)

    # ---- layer 2: shifted dy taps built from h1 directly (no scratch round trip) ----
    h1_3d = h1.reshape(bt, H, w_cmid)
    zrow = jnp.zeros((bt, 1, w_cmid), jnp.bfloat16)
    t0 = jnp.concatenate([zrow, h1_3d[:, :H - 1, :]], axis=1).reshape(bt * H, w_cmid)
    t2 = jnp.concatenate([h1_3d[:, 1:, :], zrow], axis=1).reshape(bt * H, w_cmid)
    acc2 = jnp.dot(t0, w2_ref[0], preferred_element_type=jnp.float32)
    acc2 = acc2 + jnp.dot(h1, w2_ref[1], preferred_element_type=jnp.float32)
    acc2 = acc2 + jnp.dot(t2, w2_ref[2], preferred_element_type=jnp.float32)
    o_ref[...] = jnp.maximum(acc2 + b2_ref[...], 0.0)


# --------------------------- weight packing (host side) -------------------------
def _fold_bn(p):
    """Fold eval-mode BatchNorm into the conv: scale into weights, shift as bias."""
    scale = p["gamma"] / jnp.sqrt(p["var"] + _BN_EPS)
    shift = (p["b"] - p["mean"]) * scale + p["beta"]
    kf = p["k"] * scale[None, None, None, :]
    return kf, shift


def _pack_banded(kf, width):
    """Pack (folded) 3x3 conv weights into 3 banded (W*Cin, W*Cout) matrices (one per
    kernel row dy) encoding the dx taps with implicit zero padding along W."""
    cin, cout = kf.shape[2], kf.shape[3]
    band = jnp.zeros((3, width * cin, width * cout), jnp.float32)
    for wo in range(width):                       # output spatial column
        for dx in range(3):
            wi = wo + dx - 1                      # input spatial column
            if 0 <= wi < width:                   # out-of-range taps == zero padding
                band = band.at[:, wi * cin:(wi + 1) * cin,
                               wo * cout:(wo + 1) * cout].set(kf[:, dx])
    # TODO(synk): the band is O(W^2) and only ~3/W dense; add W-tiling (K = W_tile*Cin
    # ~ 256-512) before scaling spatial size, especially on v7x (64 MiB VMEM).
    return band.astype(jnp.bfloat16)


def _rows_with_halo(x_nhwc):
    """(N,H,W,C) f32 -> (N, H+2, W*C) bf16 lane-dense rows with zero halo rows."""
    n, h, w, c = x_nhwc.shape
    rows = x_nhwc.astype(jnp.bfloat16).reshape(n, h, w * c)
    return jnp.pad(rows, ((0, 0), (1, 1), (0, 0)))


def _pick_b_tile(n, h, target_m=128):
    """Largest divisor of n with b_tile*h <= target_m, keeping >=2 grid steps when
    possible so v7x's 2 TensorCores both get a batch tile."""
    divisors = [d for d in range(1, n + 1) if n % d == 0]
    fitting = [d for d in divisors if d * h <= target_m] or [1]
    bt = max(fitting)
    if n // bt < 2 and n >= 2:
        two_step = [d for d in fitting if n // d >= 2]
        if two_step:
            bt = max(two_step)
    return bt


def double_conv_pallas(x2_nhwc, x1_nhwc, params):
    """Fused concat([x2, x1], channels) -> (Conv3x3 -> BN(eval) -> ReLU) x 2 in one pallas_call."""
    n, h, w, c_skip = x2_nhwc.shape
    c_low = x1_nhwc.shape[3]

    kf1, shift1 = _fold_bn(params["conv1"])
    kf2, shift2 = _fold_bn(params["conv2"])
    cmid, cout = kf1.shape[3], kf2.shape[3]
    # torch.cat([x2, x1], dim=1): first c_skip input channels belong to x2, rest to x1.
    w1a = _pack_banded(kf1[:, :, :c_skip, :], w)
    w1b = _pack_banded(kf1[:, :, c_skip:, :], w)
    w2 = _pack_banded(kf2, w)
    b1 = jnp.tile(shift1, (w,)).reshape(1, w * cmid).astype(jnp.float32)
    b2 = jnp.tile(shift2, (w,)).reshape(1, w * cout).astype(jnp.float32)

    x2_rows = _rows_with_halo(x2_nhwc)            # bf16: half the input DMA bytes
    x1_rows = _rows_with_halo(x1_nhwc)

    bt = _pick_b_tile(n, h)
    grid = (n // bt,)

    out_rows = pl.pallas_call(
        _double_conv_kernel,
        out_shape=jax.ShapeDtypeStruct((n * h, w * cout), jnp.float32),
        grid_spec=pltpu.PrefetchScalarGridSpec(
            num_scalar_prefetch=0,
            grid=grid,                                         # one batch tile per grid step
            in_specs=[
                pl.BlockSpec((bt, h + 2, w * c_skip), lambda i: (i, 0, 0)),
                pl.BlockSpec((bt, h + 2, w * c_low), lambda i: (i, 0, 0)),
                pl.BlockSpec((3, w * c_skip, w * cmid), lambda i: (0, 0, 0)),
                pl.BlockSpec((3, w * c_low, w * cmid), lambda i: (0, 0, 0)),
                pl.BlockSpec((1, w * cmid), lambda i: (0, 0)),
                pl.BlockSpec((3, w * cmid, w * cout), lambda i: (0, 0, 0)),
                pl.BlockSpec((1, w * cout), lambda i: (0, 0)),
            ],
            out_specs=pl.BlockSpec((bt * h, w * cout), lambda i: (i, 0)),
        ),
        compiler_params=pltpu.CompilerParams(
            dimension_semantics=("parallel",),    # batch tiles shard across v7x's 2 TCs
            vmem_limit_bytes=48 * 1024 * 1024,    # explicit budget within v7x's 64 MiB VMEM
        ),
    )(x2_rows, x1_rows, w1a, w1b, b1, w2, b2)
    return out_rows.reshape(n, h, w, cout)


# ------------------------------ Up forward (wrapper) -----------------------------
def _interp_matrix_ac(out_size, in_size):
    """align_corners=True linear interpolation matrix of shape (out_size, in_size)."""
    if in_size == 1:
        return jnp.ones((out_size, 1), jnp.float32)
    src = jnp.arange(out_size, dtype=jnp.float32) * (in_size - 1) / (out_size - 1)
    lo = jnp.clip(jnp.floor(src).astype(jnp.int32), 0, in_size - 2)
    frac = src - lo.astype(jnp.float32)
    rows = jnp.arange(out_size)
    mat = jnp.zeros((out_size, in_size), jnp.float32)
    mat = mat.at[rows, lo].add(1.0 - frac)
    mat = mat.at[rows, lo + 1].add(frac)
    return mat


def _upsample2x_align_corners(x_nhwc):
    n, h, w, c = x_nhwc.shape
    ah = _interp_matrix_ac(2 * h, h)
    aw = _interp_matrix_ac(2 * w, w)
    return jnp.einsum("ph,nhwc,qw->npqc", ah, x_nhwc, aw)


def up_forward(x1, x2, params):
    """Up(x1, x2): upsample x1 2x, pad to x2, (fused) concat + DoubleConv (Pallas).

    x1, x2 are NCHW (PyTorch layout); returns NCHW.
    """
    # TODO(synk): the reference uses a 5-D trilinear Upsample and x.size()[4]/diffZ
    # indexing that cannot feed the 4-D Conv2d stack; the 2-D bilinear
    # (align_corners=True) analog is used here and the depth diff is dropped.
    x1 = jnp.transpose(x1, (0, 2, 3, 1))
    x2 = jnp.transpose(x2, (0, 2, 3, 1))
    x1 = _upsample2x_align_corners(x1)
    dh = x2.shape[1] - x1.shape[1]
    dw = x2.shape[2] - x1.shape[2]
    x1 = jnp.pad(x1, ((0, 0), (dh // 2, dh - dh // 2),
                      (dw // 2, dw - dw // 2), (0, 0)))
    # torch.cat([x2, x1], dim=1) is fused into the kernel (two weight halves).
    y = double_conv_pallas(x2, x1, params)
    return jnp.transpose(y, (0, 3, 1, 2))


# ------------------------------ pure-JAX reference -------------------------------
def _double_conv_reference(x_nhwc, params):
    def layer(x, p):
        y = lax.conv_general_dilated(
            x, p["k"], window_strides=(1, 1), padding="SAME",
            dimension_numbers=("NHWC", "HWIO", "NHWC")) + p["b"]
        scale = p["gamma"] / jnp.sqrt(p["var"] + _BN_EPS)
        y = (y - p["mean"]) * scale + p["beta"]
        return jnp.maximum(y, 0.0)
    return layer(layer(x_nhwc, params["conv1"]), params["conv2"])


def up_forward_reference(x1, x2, params):
    x1 = jnp.transpose(x1, (0, 2, 3, 1))
    x2 = jnp.transpose(x2, (0, 2, 3, 1))
    x1 = _upsample2x_align_corners(x1)
    dh = x2.shape[1] - x1.shape[1]
    dw = x2.shape[2] - x1.shape[2]
    x1 = jnp.pad(x1, ((0, 0), (dh // 2, dh - dh // 2),
                      (dw // 2, dw - dw // 2), (0, 0)))
    x = jnp.concatenate([x2, x1], axis=-1)
    return jnp.transpose(_double_conv_reference(x, params), (0, 3, 1, 2))


# ---------------------------------- parameters -----------------------------------
def _conv_bn_params(key, cin, cout):
    kw, kb = jax.random.split(key)
    # TODO(synk): BatchNorm is folded in eval mode with init-time running stats
    # (mean=0, var=1); PyTorch's default train mode would use per-batch statistics.
    return {
        "k": jax.random.normal(kw, (3, 3, cin, cout), jnp.float32) * 0.05,
        "b": jax.random.normal(kb, (cout,), jnp.float32) * 0.05,
        "gamma": jnp.ones((cout,), jnp.float32),
        "beta": jnp.zeros((cout,), jnp.float32),
        "mean": jnp.zeros((cout,), jnp.float32),
        "var": jnp.ones((cout,), jnp.float32),
    }


def make_up_params(key, in_channels, out_channels):
    k1, k2 = jax.random.split(key)
    return {"conv1": _conv_bn_params(k1, in_channels, out_channels),
            "conv2": _conv_bn_params(k2, out_channels, out_channels)}


# -------------------------------------- main --------------------------------------
if __name__ == "__main__":
    batch = 4
    c_skip, c_low = 16, 16          # x2 (skip) channels, x1 (low-res) channels
    in_channels = c_skip + c_low    # DoubleConv input channels after concat = 32
    out_channels = 16
    hi_h, hi_w = 8, 8               # x2 spatial size; x1 is at half resolution

    key = jax.random.PRNGKey(0)
    k1, k2, kp = jax.random.split(key, 3)
    x1 = jax.random.normal(k1, (batch, c_low, hi_h // 2, hi_w // 2), jnp.float32)
    x2 = jax.random.normal(k2, (batch, c_skip, hi_h, hi_w), jnp.float32)
    params = make_up_params(kp, in_channels, out_channels)

    out = jax.block_until_ready(jax.jit(up_forward)(x1, x2, params))
    assert out.shape == (batch, out_channels, hi_h, hi_w)

    # Correctness check against a pure-JAX f32 reference (bf16 MXU operands/activations).
    ref = jax.block_until_ready(up_forward_reference(x1, x2, params))
    err = float(jnp.max(jnp.abs(out - ref)))
    assert err < 5e-2, f"Pallas vs reference mismatch: max abs err = {err}"

    print("KERNEL_OK")
</pallas_src>

<mosaic_0001>
module attributes {stable_mosaic.version = 11 : i64} {
  func.func private @main(%arg0: i32) attributes {dimension_semantics = [#tpu.dimension_semantics<core_parallel>], iteration_bounds = array<i64: 2>, tpu.core_type = #tpu.core_type<sc_scalar_subcore>, window_params = []} {
    return
  }
}

module attributes {stable_mosaic.version = 11 : i64} {
  func.func private @main(%arg0: i32) attributes {dimension_semantics = [#tpu.dimension_semantics<core_parallel>], iteration_bounds = array<i64: 2>, tpu.core_type = #tpu.core_type<sc_scalar_subcore>, window_params = []} {
    return
  }
}

module attributes {stable_mosaic.version = 11 : i64} {
  func.func @_double_conv_kernel(%arg0: i32, %arg1: memref<2x10x128xbf16, #tpu.memory_space<vmem>>, %arg2: memref<2x10x128xbf16, #tpu.memory_space<vmem>>, %arg3: memref<3x128x128xbf16, #tpu.memory_space<vmem>>, %arg4: memref<3x128x128xbf16, #tpu.memory_space<vmem>>, %arg5: memref<1x128xf32, #tpu.memory_space<vmem>>, %arg6: memref<3x128x128xbf16, #tpu.memory_space<vmem>>, %arg7: memref<1x128xf32, #tpu.memory_space<vmem>>, %arg8: memref<16x128xf32, #tpu.memory_space<vmem>>) attributes {dimension_semantics = [#tpu.dimension_semantics<parallel>], iteration_bounds = array<i64: 2>, scalar_prefetch = 0 : i64, scratch_operands = 0 : i64, tpu.core_type = #tpu.core_type<tc>, window_params = [{transform_indices = @transform_0, window_bounds = array<i64: 2, 10, 128>}, {transform_indices = @transform_1, window_bounds = array<i64: 2, 10, 128>}, {pipeline_mode = #tpu.pipeline_mode<synchronous>, transform_indices = @transform_2, window_bounds = array<i64: 3, 128, 128>}, {pipeline_mode = #tpu.pipeline_mode<synchronous>, transform_indices = @transform_3, window_bounds = array<i64: 3, 128, 128>}, {pipeline_mode = #tpu.pipeline_mode<synchronous>, transform_indices = @transform_4, window_bounds = array<i64: 1, 128>}, {pipeline_mode = #tpu.pipeline_mode<synchronous>, transform_indices = @transform_5, window_bounds = array<i64: 3, 128, 128>}, {pipeline_mode = #tpu.pipeline_mode<synchronous>, transform_indices = @transform_6, window_bounds = array<i64: 1, 128>}, {transform_indices = @transform_7, window_bounds = array<i64: 16, 128>}]} {
    %c0 = arith.constant 0 : index
    %c0_0 = arith.constant 0 : index
    %c0_1 = arith.constant 0 : index
    %0 = vector.load %arg1[%c0, %c0_0, %c0_1] : memref<2x10x128xbf16, #tpu.memory_space<vmem>>, vector<2x8x128xbf16>
    %1 = vector.shape_cast %0 : vector<2x8x128xbf16> to vector<16x128xbf16>
    %c0_2 = arith.constant 0 : index
    %c0_3 = arith.constant 0 : index
    %c0_4 = arith.constant 0 : index
    %2 = vector.load %arg3[%c0_2, %c0_3, %c0_4] : memref<3x128x128xbf16, #tpu.memory_space<vmem>>, vector<1x128x128xbf16>
    %3 = vector.shape_cast %2 : vector<1x128x128xbf16> to vector<128x128xbf16>
    %cst = arith.constant dense<0.000000e+00> : vector<16x128xf32>
    %4 = tpu.matmul %1, %3, %cst {dimension_numbers = #tpu.dot_dimension_numbers<[1], [0], [0], [1], [0, 0, 1, 1], [], []>} : vector<16x128xbf16>, vector<128x128xbf16>, vector<16x128xf32> -> vector<16x128xf32>
    %c0_5 = arith.constant 0 : index
    %c0_6 = arith.constant 0 : index
    %c0_7 = arith.constant 0 : index
    %5 = vector.load %arg2[%c0_5, %c0_6, %c0_7] : memref<2x10x128xbf16, #tpu.memory_space<vmem>>, vector<2x8x128xbf16>
    %6 = vector.shape_cast %5 : vector<2x8x128xbf16> to vector<16x128xbf16>
    %c0_8 = arith.constant 0 : index
    %c0_9 = arith.constant 0 : index
    %c0_10 = arith.constant 0 : index
    %7 = vector.load %arg4[%c0_8, %c0_9, %c0_10] : memref<3x128x128xbf16, #tpu.memory_space<vmem>>, vector<1x128x128xbf16>
    %8 = vector.shape_cast %7 : vector<1x128x128xbf16> to vector<128x128xbf16>
    %cst_11 = arith.constant dense<0.000000e+00> : vector<16x128xf32>
    %9 = tpu.matmul %6, %8, %cst_11 {dimension_numbers = #tpu.dot_dimension_numbers<[1], [0], [0], [1], [0, 0, 1, 1], [], []>} : vector<16x128xbf16>, vector<128x128xbf16>, vector<16x128xf32> -> vector<16x128xf32>
    %10 = arith.addf %4, %9 : vector<16x128xf32>
    %c0_12 = arith.constant 0 : index
    %c1 = arith.constant 1 : index
    %c0_13 = arith.constant 0 : index
    %11 = vector.load %arg1[%c0_12, %c1, %c0_13] : memref<2x10x128xbf16, #tpu.memory_space<vmem>>, vector<2x8x128xbf16>
    %12 = vector.shape_cast %11 : vector<2x8x128xbf16> to vector<16x128xbf16>
    %c1_14 = arith.constant 1 : index
    %c0_15 = arith.constant 0 : index
    %c0_16 = arith.constant 0 : index
    %13 = vector.load %arg3[%c1_14, %c0_15, %c0_16] : memref<3x128x128xbf16, #tpu.memory_space<vmem>>, vector<1x128x128xbf16>
    %14 = vector.shape_cast %13 : vector<1x128x128xbf16> to vector<128x128xbf16>
    %cst_17 = arith.constant dense<0.000000e+00> : vector<16x128xf32>
    %15 = tpu.matmul %12, %14, %cst_17 {dimension_numbers = #tpu.dot_dimension_numbers<[1], [0], [0], [1], [0, 0, 1, 1], [], []>} : vector<16x128xbf16>, vector<128x128xbf16>, vector<16x128xf32> -> vector<16x128xf32>
    %16 = arith.addf %10, %15 : vector<16x128xf32>
    %c0_18 = arith.constant 0 : index
    %c1_19 = arith.constant 1 : index
    %c0_20 = arith.constant 0 : index
    %17 = vector.load %arg2[%c0_18, %c1_19, %c0_20] : memref<2x10x128xbf16, #tpu.memory_space<vmem>>, vector<2x8x128xbf16>
    %18 = vector.shape_cast %17 : vector<2x8x128xbf16> to vector<16x128xbf16>
    %c1_21 = arith.constant 1 : index
    %c0_22 = arith.constant 0 : index
    %c0_23 = arith.constant 0 : index
    %19 = vector.load %arg4[%c1_21, %c0_22, %c0_23] : memref<3x128x128xbf16, #tpu.memory_space<vmem>>, vector<1x128x128xbf16>
    %20 = vector.shape_cast %19 : vector<1x128x128xbf16> to vector<128x128xbf16>
    %cst_24 = arith.constant dense<0.000000e+00> : vector<16x128xf32>
    %21 = tpu.matmul %18, %20, %cst_24 {dimension_numbers = #tpu.dot_dimension_numbers<[1], [0], [0], [1], [0, 0, 1, 1], [], []>} : vector<16x128xbf16>, vector<128x128xbf16>, vector<16x128xf32> -> vector<16x128xf32>
    %22 = arith.addf %16, %21 : vector<16x128xf32>
    %c0_25 = arith.constant 0 : index
    %c2 = arith.constant 2 : index
    %c0_26 = arith.constant 0 : index
    %23 = vector.load %arg1[%c0_25, %c2, %c0_26] : memref<2x10x128xbf16, #tpu.memory_space<vmem>>, vector<2x8x128xbf16>
    %24 = vector.shape_cast %23 : vector<2x8x128xbf16> to vector<16x128xbf16>
    %c2_27 = arith.constant 2 : index
    %c0_28 = arith.constant 0 : index
    %c0_29 = arith.constant 0 : index
    %25 = vector.load %arg3[%c2_27, %c0_28, %c0_29] : memref<3x128x128xbf16, #tpu.memory_space<vmem>>, vector<1x128x128xbf16>
    %26 = vector.shape_cast %25 : vector<1x128x128xbf16> to vector<128x128xbf16>
    %cst_30 = arith.constant dense<0.000000e+00> : vector<16x128xf32>
    %27 = tpu.matmul %24, %26, %cst_30 {dimension_numbers = #tpu.dot_dimension_numbers<[1], [0], [0], [1], [0, 0, 1, 1], [], []>} : vector<16x128xbf16>, vector<128x128xbf16>, vector<16x128xf32> -> vector<16x128xf32>
    %28 = arith.addf %22, %27 : vector<16x128xf32>
    %c0_31 = arith.constant 0 : index
    %c2_32 = arith.constant 2 : index
    %c0_33 = arith.constant 0 : index
    %29 = vector.load %arg2[%c0_31, %c2_32, %c0_33] : memref<2x10x128xbf16, #tpu.memory_space<vmem>>, vector<2x8x128xbf16>
    %30 = vector.shape_cast %29 : vector<2x8x128xbf16> to vector<16x128xbf16>
    %c2_34 = arith.constant 2 : index
    %c0_35 = arith.constant 0 : index
    %c0_36 = arith.constant 0 : index
    %31 = vector.load %arg4[%c2_34, %c0_35, %c0_36] : memref<3x128x128xbf16, #tpu.memory_space<vmem>>, vector<1x128x128xbf16>
    %32 = vector.shape_cast %31 : vector<1x128x128xbf16> to vector<128x128xbf16>
    %cst_37 = arith.constant dense<0.000000e+00> : vector<16x128xf32>
    %33 = tpu.matmul %30, %32, %cst_37 {dimension_numbers = #tpu.dot_dimension_numbers<[1], [0], [0], [1], [0, 0, 1, 1], [], []>} : vector<16x128xbf16>, vector<128x128xbf16>, vector<16x128xf32> -> vector<16x128xf32>
    %34 = arith.addf %28, %33 : vector<16x128xf32>
    %c0_38 = arith.constant 0 : index
    %c0_39 = arith.constant 0 : index
    %35 = vector.load %arg5[%c0_38, %c0_39] : memref<1x128xf32, #tpu.memory_space<vmem>>, vector<1x128xf32>
    %36 = vector.broadcast %35 : vector<1x128xf32> to vector<16x128xf32>
    %37 = arith.addf %34, %36 : vector<16x128xf32>
    %cst_40 = arith.constant 0.000000e+00 : f32
    %38 = vector.broadcast %cst_40 : f32 to vector<16x128xf32>
    %39 = arith.maximumf %37, %38 : vector<16x128xf32>
    %40 = arith.truncf %39 : vector<16x128xf32> to vector<16x128xbf16>
    %41 = vector.shape_cast %40 : vector<16x128xbf16> to vector<2x8x128xbf16>
    %cst_41 = arith.constant 0.000000e+00 : bf16
    %42 = vector.broadcast %cst_41 : bf16 to vector<2x1x128xbf16>
    %43 = vector.extract_strided_slice %41 {offsets = [0, 0, 0], sizes = [2, 7, 128], strides = [1, 1, 1]} : vector<2x8x128xbf16> to vector<2x7x128xbf16>
    %44 = tpu.concatenate %42, %43 in 1 : vector<2x1x128xbf16>, vector<2x7x128xbf16> -> vector<2x8x128xbf16>
    %45 = vector.shape_cast %44 : vector<2x8x128xbf16> to vector<16x128xbf16>
    %46 = vector.extract_strided_slice %41 {offsets = [0, 1, 0], sizes = [2, 7, 128], strides = [1, 1, 1]} : vector<2x8x128xbf16> to vector<2x7x128xbf16>
    %47 = tpu.concatenate %46, %42 in 1 : vector<2x7x128xbf16>, vector<2x1x128xbf16> -> vector<2x8x128xbf16>
    %48 = vector.shape_cast %47 : vector<2x8x128xbf16> to vector<16x128xbf16>
    %c0_42 = arith.constant 0 : index
    %c0_43 = arith.constant 0 : index
    %c0_44 = arith.constant 0 : index
    %49 = vector.load %arg6[%c0_42, %c0_43, %c0_44] : memref<3x128x128xbf16, #tpu.memory_space<vmem>>, vector<1x128x128xbf16>
    %50 = vector.shape_cast %49 : vector<1x128x128xbf16> to vector<128x128xbf16>
    %cst_45 = arith.constant dense<0.000000e+00> : vector<16x128xf32>
    %51 = tpu.matmul %45, %50, %cst_45 {dimension_numbers = #tpu.dot_dimension_numbers<[1], [0], [0], [1], [0, 0, 1, 1], [], []>} : vector<16x128xbf16>, vector<128x128xbf16>, vector<16x128xf32> -> vector<16x128xf32>
    %c1_46 = arith.constant 1 : index
    %c0_47 = arith.constant 0 : index
    %c0_48 = arith.constant 0 : index
    %52 = vector.load %arg6[%c1_46, %c0_47, %c0_48] : memref<3x128x128xbf16, #tpu.memory_space<vmem>>, vector<1x128x128xbf16>
    %53 = vector.shape_cast %52 : vector<1x128x128xbf16> to vector<128x128xbf16>
    %cst_49 = arith.constant dense<0.000000e+00> : vector<16x128xf32>
    %54 = tpu.matmul %40, %53, %cst_49 {dimension_numbers = #tpu.dot_dimension_numbers<[1], [0], [0], [1], [0, 0, 1, 1], [], []>} : vector<16x128xbf16>, vector<128x128xbf16>, vector<16x128xf32> -> vector<16x128xf32>
    %55 = arith.addf %51, %54 : vector<16x128xf32>
    %c2_50 = arith.constant 2 : index
    %c0_51 = arith.constant 0 : index
    %c0_52 = arith.constant 0 : index
    %56 = vector.load %arg6[%c2_50, %c0_51, %c0_52] : memref<3x128x128xbf16, #tpu.memory_space<vmem>>, vector<1x128x128xbf16>
    %57 = vector.shape_cast %56 : vector<1x128x128xbf16> to vector<128x128xbf16>
    %cst_53 = arith.constant dense<0.000000e+00> : vector<16x128xf32>
    %58 = tpu.matmul %48, %57, %cst_53 {dimension_numbers = #tpu.dot_dimension_numbers<[1], [0], [0], [1], [0, 0, 1, 1], [], []>} : vector<16x128xbf16>, vector<128x128xbf16>, vector<16x128xf32> -> vector<16x128xf32>
    %59 = arith.addf %55, %58 : vector<16x128xf32>
    %c0_54 = arith.constant 0 : index
    %c0_55 = arith.constant 0 : index
    %60 = vector.load %arg7[%c0_54, %c0_55] : memref<1x128xf32, #tpu.memory_space<vmem>>, vector<1x128xf32>
    %61 = vector.broadcast %60 : vector<1x128xf32> to vector<16x128xf32>
    %62 = arith.addf %59, %61 : vector<16x128xf32>
    %cst_56 = arith.constant 0.000000e+00 : f32
    %63 = vector.broadcast %cst_56 : f32 to vector<16x128xf32>
    %64 = arith.maximumf %62, %63 : vector<16x128xf32>
    %c0_57 = arith.constant 0 : index
    %c0_58 = arith.constant 0 : index
    %65 = vector.load %arg8[%c0_57, %c0_58] : memref<16x128xf32, #tpu.memory_space<vmem>>, vector<16x128xf32>
    tpu.vector_store %arg8[%c0_57, %c0_58], %64 {strides = array<i32>} : memref<16x128xf32, #tpu.memory_space<vmem>>, vector<16x128xf32>,
    return
  }
  func.func @transform_0(%arg0: i32) -> (i32, i32, i32) {
    %c0_i32 = arith.constant 0 : i32
    %c0_i32_0 = arith.constant 0 : i32
    %c0_i32_1 = arith.constant 0 : i32
    return %arg0, %c0_i32, %c0_i32_0 : i32, i32, i32
  }
  func.func @transform_1(%arg0: i32) -> (i32, i32, i32) {
    %c0_i32 = arith.constant 0 : i32
    %c0_i32_0 = arith.constant 0 : i32
    %c0_i32_1 = arith.constant 0 : i32
    return %arg0, %c0_i32, %c0_i32_0 : i32, i32, i32
  }
  func.func @transform_2(%arg0: i32) -> (i32, i32, i32) {
    %c0_i32 = arith.constant 0 : i32
    %c0_i32_0 = arith.constant 0 : i32
    %c0_i32_1 = arith.constant 0 : i32
    %c0_i32_2 = arith.constant 0 : i32
    return %c0_i32, %c0_i32_0, %c0_i32_1 : i32, i32, i32
  }
  func.func @transform_3(%arg0: i32) -> (i32, i32, i32) {
    %c0_i32 = arith.constant 0 : i32
    %c0_i32_0 = arith.constant 0 : i32
    %c0_i32_1 = arith.constant 0 : i32
    %c0_i32_2 = arith.constant 0 : i32
    return %c0_i32, %c0_i32_0, %c0_i32_1 : i32, i32, i32
  }
  func.func @transform_4(%arg0: i32) -> (i32, i32) {
    %c0_i32 = arith.constant 0 : i32
    %c0_i32_0 = arith.constant 0 : i32
    %c0_i32_1 = arith.constant 0 : i32
    return %c0_i32, %c0_i32_0 : i32, i32
  }
  func.func @transform_5(%arg0: i32) -> (i32, i32, i32) {
    %c0_i32 = arith.constant 0 : i32
    %c0_i32_0 = arith.constant 0 : i32
    %c0_i32_1 = arith.constant 0 : i32
    %c0_i32_2 = arith.constant 0 : i32
    return %c0_i32, %c0_i32_0, %c0_i32_1 : i32, i32, i32
  }
  func.func @transform_6(%arg0: i32) -> (i32, i32) {
    %c0_i32 = arith.constant 0 : i32
    %c0_i32_0 = arith.constant 0 : i32
    %c0_i32_1 = arith.constant 0 : i32
    return %c0_i32, %c0_i32_0 : i32, i32
  }
  func.func @transform_7(%arg0: i32) -> (i32, i32) {
    %c0_i32 = arith.constant 0 : i32
    %c0_i32_0 = arith.constant 0 : i32
    return %arg0, %c0_i32 : i32, i32
  }
}

</mosaic_0001>

<bundles_post_ra>
// kernel: tile.13
= control target key start
LH: loop header
LB: loop body
LE: loop exit
PB: predicated region body
PF: predicated region fallthrough
CT: control target
= control target key end

     0   :  { %s22_s0 = inlined_call_operand.vmem [shape: f32[16], index: 0, kind: input, shape index: {}]   ;;  %s23_s1 = inlined_call_operand.vmem [shape: f32[8,16], index: 1, kind: output, shape index: {}]  }
   0x1   :  { %v4_v0 = vld [vmem:[%s22_s0] ss:$0 sm:$0xff] }
   0x2   :  { %5 = vst [vmem:[%s23_s1] sm:$0xff] %v4_v0 }

// kernel: tile.14
= control target key start
LH: loop header
LB: loop body
LE: loop exit
PB: predicated region body
PF: predicated region fallthrough
CT: control target
= control target key end

     0   :  { %s69_s10 = smov 112   ;;  %s70_s11 = smov 80   ;;  %vm3_vm0 = vcmask 130048   ;;  %vm9_vm1 = vcmask 1048448   ;;  %vm15_vm2 = vcmask 917248   ;;  %vm21_vm3 = vcmask 786048   ;;  %s113_s0 = inlined_call_operand.vmem [shape: f32[8,16], index: 0, kind: input, shape index: {}]   ;;  %s114_s1 = inlined_call_operand.vmem [shape: f32[1,128], index: 1, kind: output, shape index: {}]  }
   0x1   :  { %v55_v0 = vld [vmem:[%s113_s0 + $0x7] sm:$0x1]   ;;  %v57_v1 = vld [vmem:[%s113_s0 + $0x5] sm:$0x1]   ;;  %v56_v2 = vld [vmem:[%s113_s0 + $0x6] sm:$0x1]  }
   0x2   :  { %7 = vrot.lane.b32.xlu0 %v55_v0, %s69_s10  ;;  %19 = vrot.lane.b32.xlu1 %v57_v1, %s70_s11  ;;  %v58_v3 = vld [vmem:[%s113_s0 + $0x4] sm:$0x1]   ;;  %v2_v4 = vld [vmem:[%s113_s0] sm:$0x1]   ;;  %s71_s18 = smov 96   ;;  %s72_s19 = smov 64  }
   0x3   :  { %4 = vst.msk [vmem:[#allocation0] sm:$0x1] %vm3_vm0, %v2_v4   ;;  %v59_v5 = vld [vmem:[%s113_s0 + $0x3] sm:$0x1]   ;;  %v60_v6 = vld [vmem:[%s113_s0 + $0x2] sm:$0x1]  }
   0x4   :  { %s73_s24 = smov 48   ;;  %s74_s25 = smov 32   ;;  %v61_v7 = vld [vmem:[%s113_s0 + $0x1] sm:$0x1]   ;;  %vm27_vm4 = vcmask 654848   ;;  %vm33_vm5 = vcmask 523648  }
   0x5   :  { %s75_s0 = smov 16   ;;  %vm39_vm6 = vcmask 392448   ;;  %vm45_vm7 = vcmask 261248  }
   0x6   :  { %13 = vrot.lane.b32.xlu0 %v56_v2, %s71_s18  ;;  %25 = vrot.lane.b32.xlu1 %v58_v3, %s72_s19 }
   0xa   :  { %31 = vrot.lane.b32.xlu0 %v59_v5, %s73_s24  ;;  %37 = vrot.lane.b32.xlu1 %v60_v6, %s74_s25 }
   0xe   :  { %43 = vrot.lane.b32.xlu0 %v61_v7, %s75_s0 }
  0x74   :  { %v8_v8 = vpop.permute.xlu0 %7   ;;  %v20_v9 = vpop.permute.xlu1 %19  }
  0x75   :  { %10 = vst.msk [vmem:[#allocation0] sm:$0x1] %vm9_vm1, %v8_v8  }
  0x78   :  { %v14_v10 = vpop.permute.xlu0 %13   ;;  %v26_v11 = vpop.permute.xlu1 %25  }
  0x79   :  { %16 = vst.msk [vmem:[#allocation0] sm:$0x1] %vm15_vm2, %v14_v10  }
  0x7a   :  { %22 = vst.msk [vmem:[#allocation0] sm:$0x1] %vm21_vm3, %v20_v9  }
  0x7b   :  { %28 = vst.msk [vmem:[#allocation0] sm:$0x1] %vm27_vm4, %v26_v11  }
  0x7c   :  { %v32_v12 = vpop.permute.xlu0 %31   ;;  %v38_v13 = vpop.permute.xlu1 %37  }
  0x7d   :  { %34 = vst.msk [vmem:[#allocation0] sm:$0x1] %vm33_vm5, %v32_v12  }
  0x7e   :  { %40 = vst.msk [vmem:[#allocation0] sm:$0x1] %vm39_vm6, %v38_v13  }
  0x80   :  { %v44_v14 = vpop.permute.xlu0 %43  }
  0x81   :  { %46 = vst.msk [vmem:[#allocation0] sm:$0x1] %vm45_vm7, %v44_v14  }
  0x88   :  { %v51_v15 = vld [vmem:[#allocation0] sm:$0x1] }
  0x89   :  { %54 = vst [vmem:[%s114_s1] sm:$0x1] %v51_v15 }

// kernel: up_forward.1
= control target key start
LH: loop header
LB: loop body
LE: loop exit
PB: predicated region body
PF: predicated region fallthrough
CT: control target
= control target key end

     0   :  { %s2141_s24 = smov 0   ;;  %s2527_s0 = inlined_call_operand.vmem [shape: bf16[4,10,128], index: 0, kind: input, shape index: {}]   ;;  %s2528_s1 = inlined_call_operand.vmem [shape: bf16[4,10,128], index: 1, kind: input, shape index: {}]   ;;  %s2529_s2 = inlined_call_operand.vmem [shape: bf16[3,128,128], index: 2, kind: input, shape index: {}]   ;;  %s2530_s3 = inlined_call_operand.vmem [shape: bf16[3,128,128], index: 3, kind: input, shape index: {}]   ;;  %s2531_s4 = inlined_call_operand.vmem [shape: f32[1,128], index: 4, kind: input, shape index: {}]   ;;  %s2532_s5 = inlined_call_operand.vmem [shape: bf16[3,128,128], index: 5, kind: input, shape index: {}]   ;;  %s2533_s6 = inlined_call_operand.vmem [shape: f32[1,128], index: 6, kind: input, shape index: {}]   ;;  %s2534_s7 = inlined_call_operand.vmem [shape: f32[32,128], index: 7, kind: output, shape index: {}]  }
   0x1 LB: > { %s1543_s25 = sadd.s32 4294967295, %s2097_s24   ;;  %p1547_p0 = scmp.ge.s32.totalorder %s2097_s24, 1  ;;  %s2097_s24 = sphi %s2141_s24, %s17_s24  }
   0x2   : > { %p251_p1 = scmp.lt.s32.totalorder %s2097_s24, 3 }
   0x4   : > { %p252_p2 = pnand %p1547_p0, %p251_p1 }
   0x5   : > { %s1548_s9 = sshll.u32 (!%p252_p2), %s1543_s25, 1 }
   0x6   : > { %255 = sbr.rel (%p252_p2) target bundleno = 551 (0x227), region = 48  ;;  %p291_p3 = scmp.lt.s32.totalorder (!%p252_p2), %s1548_s9, 3 }
   0xb   : > { %v2017_v0 = vld [vmem:[%s2530_s3 + $0x38] sm:$0xff]   ;;  %v2099_v1 = vmov 0.0   ;;  %v2019_v3 = vld [vmem:[%s2530_s3 + $0x30] sm:$0xff]   ;;  %vm2100_vm0 = vmmov 0   ;;  %v2021_v5 = vld [vmem:[%s2530_s3 + $0x28] sm:$0xff]   ;;  %s2538_s9 = smov (!%p291_p3, %s1548_s9), 3 }
   0xc   : > { %1827 = vmatprep.subr.bf16.mxu0 %v2099_v1  ;;  %1847 = vmatprep.subr.bf16.mxu1 %v2099_v1  ;;  %v2018_v2 = vld [vmem:[%s2529_s2 + $0x38] sm:$0xff]   ;;  %v2020_v4 = vld [vmem:[%s2529_s2 + $0x30] sm:$0xff]   ;;  %v2022_v6 = vld [vmem:[%s2529_s2 + $0x28] sm:$0xff]   ;;  %s2185_s20 = sshll.u32 %s2538_s9, 3  ;;  %vm541_vm1 = vsmask.f32 3328 }
   0xd   : > { %1828 = vmatpush3.bf16.msra.mxu0 %v2017_v0  ;;  %1843 = vmatprep.mubr.msk.bf16.mxu0 %vm2100_vm0, %v2099_v1  ;;  %v2023_v7 = vld [vmem:[%s2530_s3 + $0x20] sm:$0xff]   ;;  %v2025_v9 = vld [vmem:[%s2530_s3 + $0x18] sm:$0xff]   ;;  %s2198_s28 = scalar_lea.vmem %s2528_s1, %s2185_s20  ;;  %s2205_s8 = scalar_lea.vmem %s2527_s0, %s2185_s20  ;;  %v2027_v11 = vld [vmem:[%s2530_s3 + $0x10] sm:$0xff]   ;;  %vm542_vm2 = vsmask.f32 7440  ;;  %vm834_vm4 = vcmask 1042432  }
   0xe   : > { %1848 = vmatpush3.bf16.msra.mxu1 %v2018_v2  ;;  %1829 = vmatprep.subr.bf16.mxu0 %v2099_v1  ;;  %v2024_v8 = vld [vmem:[%s2529_s2 + $0x20] sm:$0xff]   ;;  %v2026_v10 = vld [vmem:[%s2529_s2 + $0x18] sm:$0xff]   ;;  %v2028_v12 = vld [vmem:[%s2529_s2 + $0x10] sm:$0xff]   ;;  %vm835_vm5 = vcmask 1046532   ;;  %vm1116_vm7 = vcmask 1040384   ;;  %vm1127_vm10 = vcmask 1043456   ;;  %s308_s19 = scalar_lea.vmem %s2534_s7, %s2185_s20 }
   0xf   : > { %1849 = vmatprep.subr.bf16.mxu1 %v2099_v1  ;;  %1863 = vmatprep.mubr.msk.bf16.mxu1 %vm2100_vm0, %v2099_v1  ;;  %v2029_v13 = vld [vmem:[%s2530_s3 + $0x8] sm:$0xff]   ;;  %v2031_v15 = vld [vmem:[%s2530_s3] sm:$0xff]   ;;  %v2035_v19 = vld [vmem:[%s2529_s2 + $0x78] sm:$0xff]   ;;  %vm1117_vm8 = vsmask.f32 256 }
  0x10   : > { %v2030_v14 = vld [vmem:[%s2529_s2 + $0x8] sm:$0xff]   ;;  %v2032_v16 = vld [vmem:[%s2529_s2] sm:$0xff]   ;;  %v2036_v20 = vld [vmem:[%s2530_s3 + $0x78] sm:$0xff]  }
  0x11   : > { %1830 = vmatpush3.bf16.msra.mxu0 %v2019_v3  ;;  %v2033_v17 = vld [vmem:[%s2198_s28] ss:$8 sps:$4 sm:$0xff]   ;;  %v2037_v21 = vld [vmem:[%s2529_s2 + $0x70] sm:$0xff]   ;;  %v2273_v37 = vld [vmem:[%s2205_s8 + $0x4] sm:$0x1] }
  0x12   : > { %1850 = vmatpush3.bf16.msra.mxu1 %v2020_v4  ;;  %1831 = vmatprep.subr.bf16.mxu0 %v2099_v1  ;;  %v2034_v18 = vld [vmem:[%s2205_s8] ss:$8 sps:$4 sm:$0xff]   ;;  %v2038_v22 = vld [vmem:[%s2530_s3 + $0x70] sm:$0xff]   ;;  %v2276_v38 = vld [vmem:[%s2205_s8 + $0xc] sm:$0x1]  ;;  %v554_v53 = vshll.u32 %v2273_v37, 16 }
  0x13   : > { %1851 = vmatprep.subr.bf16.mxu1 %v2099_v1  ;;  %v537_v23 = vld [vmem:[%s2205_s8] sm:$0xf]  ;;  %v2039_v24 = vld [vmem:[%s2529_s2 + $0x68] sm:$0xff]   ;;  %v2043_v41 = vld [vmem:[%s2529_s2 + $0x58] sm:$0xff]   ;;  %v568_v54 = vshll.u32 %v2276_v38, 16 }
  0x14   : > { %v539_v25 = vld [vmem:[%s2205_s8 + $0x8] sm:$0xf]  ;;  %v684_v27 = vld [vmem:[%s2198_s28] sm:$0xf]  ;;  %v545_v28 = vshrl.u32 %v537_v23, 16  ;;  %v548_v29 = vshll.u32 %v537_v23, 16  ;;  %vm2314_vm3 = vmor %vm541_vm1, %vm542_vm2 }
  0x15   : > { %1832 = vmatpush3.bf16.msra.mxu0 %v2021_v5  ;;  %v2040_v26 = vld [vmem:[%s2530_s3 + $0x68] sm:$0xff]   ;;  %v559_v31 = vshrl.u32 %v539_v25, 16  ;;  %v562_v32 = vshll.u32 %v539_v25, 16  ;;  %v2041_v33 = vld [vmem:[%s2529_s2 + $0x60] sm:$0xff]   ;;  %v689_v35 = vshrl.u32 %v684_v27, 16  ;;  %v692_v36 = vshll.u32 %v684_v27, 16  ;;  %vm836_vm6 = vmor %vm834_vm4, %vm835_vm5 }
  0x16   : > { %1852 = vmatpush3.bf16.msra.mxu1 %v2022_v6  ;;  %1833 = vmatprep.subr.bf16.mxu0 %v2099_v1  ;;  %v686_v30 = vld [vmem:[%s2198_s28 + $0x8] sm:$0xf]  ;;  %v2042_v34 = vld [vmem:[%s2530_s3 + $0x60] sm:$0xff]   ;;  %v547_v42 = vrot.slane %v545_v28, 4  ;;  %v550_v43 = vrot.slane %v548_v29, 5  ;;  %v2044_v45 = vld [vmem:[%s2530_s3 + $0x58] sm:$0xff]  }
  0x17   : > { %1853 = vmatprep.subr.bf16.mxu1 %v2099_v1  ;;  %v703_v39 = vshrl.u32 %v686_v30, 16  ;;  %v706_v40 = vshll.u32 %v686_v30, 16  ;;  %v2283_v44 = vld [vmem:[%s2198_s28 + $0x4] sm:$0x1]  ;;  %v561_v46 = vrot.slane %v559_v31, 4  ;;  %v564_v47 = vrot.slane %v562_v32, 5  ;;  %vm1118_vm9 = vmand %vm1116_vm7, %vm1117_vm8 }
  0x18   : > { %v2289_v48 = vld [vmem:[%s2198_s28 + $0xc] sm:$0x1]  ;;  %v691_v49 = vrot.slane %v689_v35, 4  ;;  %v694_v50 = vrot.slane %v692_v36, 5  ;;  %v2045_v55 = vld [vmem:[%s2529_s2 + $0x50] sm:$0xff]   ;;  %v551_v56 = vor.u32 %v550_v43, %v547_v42  ;;  %v698_v57 = vshll.u32 %v2283_v44, 16  ;;  %vm1128_vm11 = vmand %vm1127_vm10, %vm541_vm1 }
  0x19   : > { %1834 = vmatpush3.bf16.msra.mxu0 %v2023_v7  ;;  %v705_v51 = vrot.slane %v703_v39, 4  ;;  %v708_v52 = vrot.slane %v706_v40, 5  ;;  %v2046_v58 = vld [vmem:[%s2530_s3 + $0x50] sm:$0xff]   ;;  %v565_v59 = vor.u32 %v564_v47, %v561_v46  ;;  %v712_v60 = vshll.u32 %v2289_v48, 16  ;;  %v2047_v63 = vld [vmem:[%s2529_s2 + $0x48] sm:$0xff]   ;;  %v2057_v25 = vld [vmem:[%s2529_s2 + $0xa0] sm:$0xff]  }
  0x1a   : > { %1854 = vmatpush3.bf16.msra.mxu1 %v2024_v8  ;;  %1835 = vmatprep.subr.bf16.mxu0 %v2099_v1  ;;  %v695_v61 = vor.u32 %v694_v50, %v691_v49  ;;  %v556_v0 = vrot.slane %v554_v53, 5  ;;  %v570_v2 = vrot.slane %v568_v54, 5  ;;  %v2048_v3 = vld [vmem:[%s2530_s3 + $0x48] sm:$0xff]   ;;  %v552_v4 = vrot.slane %v551_v56, 4  ;;  %v2059_v27 = vld [vmem:[%s2529_s2 + $0x98] sm:$0xff]   ;;  %v2061_v29 = vld [vmem:[%s2529_s2 + $0x90] sm:$0xff]  }
  0x1b   : > { %1855 = vmatprep.subr.bf16.mxu1 %v2099_v1  ;;  %v709_v62 = vor.u32 %v708_v52, %v705_v51  ;;  %v700_v5 = vrot.slane %v698_v57, 5  ;;  %v566_v6 = vrot.slane %v565_v59, 4  ;;  %v714_v7 = vrot.slane %v712_v60, 5  ;;  %v2055_v23 = vld [vmem:[%s2529_s2 + $0xa8] sm:$0xff]   ;;  %v2060_v28 = vld [vmem:[%s2530_s3 + $0x98] sm:$0xff]   ;;  %v2062_v30 = vld [vmem:[%s2530_s3 + $0x90] sm:$0xff]  }
  0x1c   : > { %v828_v31 = vld [vmem:[%s2205_s8] sm:$0xe]  ;;  %v829_v32 = vld [vmem:[%s2205_s8 + $0x8] sm:$0xe]  ;;  %v839_v39 = vrot.slane %v2273_v37, 5  ;;  %v969_v47 = vrot.slane %v2289_v48, 5 }
  0x1d   : > { %1836 = vmatpush3.bf16.msra.mxu0 %v2025_v9  ;;  %v696_v9 = vrot.slane %v695_v61, 4  ;;  %v2063_v35 = vld [vmem:[%s2529_s2 + $0x88] sm:$0xff]   ;;  %v1624_v36 = vrot.slane %v828_v31, 9  ;;  %v1625_v40 = vrot.slane %v829_v32, 9  ;;  %v2065_v37 = vld [vmem:[%s2529_s2 + $0x80] sm:$0xff]   ;;  %v2067_v53 = vld [vmem:[%s2532_s5 + $0x78] sm:$0xff]  }
  0x1e   : > { %1856 = vmatpush3.bf16.msra.mxu1 %v2026_v10  ;;  %1837 = vmatprep.subr.bf16.mxu0 %v2099_v1  ;;  %v710_v10 = vrot.slane %v709_v62, 4  ;;  %v2064_v42 = vld [vmem:[%s2530_s3 + $0x88] sm:$0xff]   ;;  %v2066_v50 = vld [vmem:[%s2530_s3 + $0x80] sm:$0xff]   ;;  %v2070_v54 = vld [vmem:[%s2532_s5 + $0x38] sm:$0xff]  }
  0x1f   : > { %1857 = vmatprep.subr.bf16.mxu1 %v2099_v1  ;;  %v2072_v56 = vld [vmem:[%s2532_s5 + $0x30] sm:$0xff]   ;;  %v2069_v57 = vld [vmem:[%s2532_s5 + $0x68] sm:$0xff]   ;;  %v2073_v59 = vld [vmem:[%s2532_s5 + $0x58] sm:$0xff]  }
  0x20   : > { %v2074_v60 = vld [vmem:[%s2532_s5 + $0x28] sm:$0xff]   ;;  %v2075_v61 = vld [vmem:[%s2532_s5 + $0x50] sm:$0xff]   ;;  %v2076_v62 = vld [vmem:[%s2532_s5 + $0x20] sm:$0xff]  }
  0x21   : > { %1838 = vmatpush3.bf16.msra.mxu0 %v2027_v11  ;;  %v2049_v11 = vld [vmem:[%s2529_s2 + $0x40] sm:$0xff]  }
  0x22   : > { %1858 = vmatpush3.bf16.msra.mxu1 %v2028_v12  ;;  %1839 = vmatprep.subr.bf16.mxu0 %v2099_v1  ;;  %v557_v12 = vsel %vm2314_vm3, %v552_v4, %v556_v0  ;;  %v2078_v0 = vld [vmem:[%s2532_s5 + $0x18] sm:$0xff]   ;;  %v2082_v4 = vld [vmem:[%s2532_s5 + $0x8] sm:$0xff]  }
  0x23   : > { %1859 = vmatprep.subr.bf16.mxu1 %v2099_v1 }
  0x25   : > { %1840 = vmatpush3.bf16.msra.mxu0 %v2029_v13  ;;  %v571_v13 = vsel %vm2314_vm3, %v566_v6, %v570_v2  ;;  %v2079_v2 = vld [vmem:[%s2532_s5 + $0x40] sm:$0xff]  }
  0x26   : > { %1860 = vmatpush3.bf16.msra.mxu1 %v2030_v14  ;;  %1841 = vmatprep.subr.bf16.mxu0 %v2099_v1  ;;  %v2050_v14 = vld [vmem:[%s2530_s3 + $0x40] sm:$0xff]  }
  0x27   : > { %1861 = vmatprep.subr.bf16.mxu1 %v2099_v1 }
  0x29   : > { %1842 = vmatpush3.bf16.msra.mxu0 %v2031_v15  ;;  %v701_v15 = vsel %vm2314_vm3, %v696_v9, %v700_v5  ;;  %v2084_v5 = vld [vmem:[%s2532_s5] sm:$0xff]  }
  0x2a   : > { %1862 = vmatpush3.bf16.msra.mxu1 %v2032_v16  ;;  %1867 = vmatprep.subr.bf16.mxu0 %v2099_v1  ;;  %v715_v16 = vsel %vm2314_vm3, %v710_v10, %v714_v7 }
  0x2b   : > { %1887 = vmatprep.subr.bf16.mxu1 %v2099_v1 }
  0x2c   : > { %1844 = vmatmul.mubr.bf16.vlgmr.msra.gmra.mxu0 %v2033_v17  ;;  %v2051_v17 = vld [vmem:[%s2529_s2 + $0xb8] sm:$0xff]  }
  0x2d   : > { %1864 = vmatmul.mubr.bf16.vlgmr.msra.gmra.mxu1 %v2034_v18  ;;  %1868 = vmatpush3.bf16.msra.mxu0 %v2035_v19  ;;  %v1590_v18 = vcombine.low %v557_v12, %v571_v13  ;;  %v2052_v19 = vld [vmem:[%s2530_s3 + $0xb8] sm:$0xff]  }
  0x2e   : > { %1888 = vmatpush3.bf16.msra.mxu1 %v2036_v20  ;;  %1869 = vmatprep.subr.bf16.mxu0 %v2099_v1  ;;  %v1615_v20 = vcombine.low %v701_v15, %v715_v16 }
  0x2f   : > { %1889 = vmatprep.subr.bf16.mxu1 %v2099_v1  ;;  %1883 = vmatprep.mubr.msk.bf16.mxu0 %vm2100_vm0, %v2099_v1 }
  0x30   : > { %1903 = vmatprep.mubr.msk.bf16.mxu1 %vm2100_vm0, %v2099_v1 }
  0x31   : > { %1870 = vmatpush3.bf16.msra.mxu0 %v2037_v21  ;;  %v2053_v21 = vld [vmem:[%s2529_s2 + $0xb0] sm:$0xff]  }
  0x32   : > { %1890 = vmatpush3.bf16.msra.mxu1 %v2038_v22  ;;  %1871 = vmatprep.subr.bf16.mxu0 %v2099_v1  ;;  %v2054_v22 = vld [vmem:[%s2530_s3 + $0xb0] sm:$0xff]  }
  0x33   : > { %1891 = vmatprep.subr.bf16.mxu1 %v2099_v1 }
  0x35   : > { %1872 = vmatpush3.bf16.msra.mxu0 %v2039_v24  ;;  %v2056_v24 = vld [vmem:[%s2530_s3 + $0xa8] sm:$0xff]  }
  0x36   : > { %1892 = vmatpush3.bf16.msra.mxu1 %v2040_v26  ;;  %1873 = vmatprep.subr.bf16.mxu0 %v2099_v1  ;;  %v2058_v26 = vld [vmem:[%s2530_s3 + $0xa0] sm:$0xff]  }
  0x37   : > { %1893 = vmatprep.subr.bf16.mxu1 %v2099_v1 }
  0x39   : > { %1874 = vmatpush3.bf16.msra.mxu0 %v2041_v33  ;;  %v957_v33 = vld [vmem:[%s2198_s28] sm:$0xe] }
  0x3a   : > { %1894 = vmatpush3.bf16.msra.mxu1 %v2042_v34  ;;  %1875 = vmatprep.subr.bf16.mxu0 %v2099_v1  ;;  %v958_v34 = vld [vmem:[%s2198_s28 + $0x8] sm:$0xe]  ;;  %v1651_v43 = vrot.slane %v957_v33, 9 }
  0x3b   : > { %1895 = vmatprep.subr.bf16.mxu1 %v2099_v1  ;;  %v1652_v46 = vrot.slane %v958_v34, 9 }
  0x3d   : > { %1876 = vmatpush3.bf16.msra.mxu0 %v2043_v41  ;;  %v843_v41 = vrot.slane %v2276_v38, 5  ;;  %v840_v38 = vsel %vm836_vm6, %v1624_v36, %v839_v39  ;;  %v970_v51 = vsel %vm836_vm6, %v1652_v46, %v969_v47 }
  0x3e   : > { %1896 = vmatpush3.bf16.msra.mxu1 %v2044_v45  ;;  %1877 = vmatprep.subr.bf16.mxu0 %v2099_v1  ;;  %v965_v45 = vrot.slane %v2283_v44, 5 }
  0x3f   : > { %1897 = vmatprep.subr.bf16.mxu1 %v2099_v1  ;;  %v844_v49 = vsel %vm836_vm6, %v1625_v40, %v843_v41 }
  0x40   : > { %v966_v44 = vsel %vm836_vm6, %v1651_v43, %v965_v45  ;;  %v1642_v48 = vcombine.low %v840_v38, %v844_v49  ;;  %v2081_v49 = vld [vmem:[%s2532_s5 + $0xb8] sm:$0xff]  }
  0x41   : > { %1878 = vmatpush3.bf16.msra.mxu0 %v2045_v55  ;;  %v1669_v52 = vcombine.low %v966_v44, %v970_v51  ;;  %v2068_v55 = vld [vmem:[%s2532_s5 + $0x70] sm:$0xff]  }
  0x42   : > { %1898 = vmatpush3.bf16.msra.mxu1 %v2046_v58  ;;  %1879 = vmatprep.subr.bf16.mxu0 %v2099_v1  ;;  %v2071_v58 = vld [vmem:[%s2532_s5 + $0x60] sm:$0xff]  }
  0x43   : > { %1899 = vmatprep.subr.bf16.mxu1 %v2099_v1 }
  0x45   : > { %1880 = vmatpush3.bf16.msra.mxu0 %v2047_v63  ;;  %v2077_v63 = vld [vmem:[%s2532_s5 + $0x48] sm:$0xff]  }
  0x46   : > { %1900 = vmatpush3.bf16.msra.mxu1 %v2048_v3  ;;  %1881 = vmatprep.subr.bf16.mxu0 %v2099_v1  ;;  %v2080_v3 = vld [vmem:[%s2532_s5 + $0x10] sm:$0xff]  }
  0x47   : > { %1901 = vmatprep.subr.bf16.mxu1 %v2099_v1 }
  0x49   : > { %1882 = vmatpush3.bf16.msra.mxu0 %v2049_v11 }
  0x4a   : > { %1902 = vmatpush3.bf16.msra.mxu1 %v2050_v14  ;;  %1907 = vmatprep.subr.bf16.mxu0 %v2099_v1 }
  0x4b   : > { %1927 = vmatprep.subr.bf16.mxu1 %v2099_v1 }
  0x4c   : > { %1884 = vmatmul.mubr.bf16.vlgmr.msra.gmra.mxu0 %v1590_v18 }
  0x4d   : > { %1904 = vmatmul.mubr.bf16.vlgmr.msra.gmra.mxu1 %v1615_v20  ;;  %1908 = vmatpush3.bf16.msra.mxu0 %v2051_v17 }
  0x4e   : > { %1928 = vmatpush3.bf16.msra.mxu1 %v2052_v19  ;;  %1909 = vmatprep.subr.bf16.mxu0 %v2099_v1 }
  0x4f   : > { %1929 = vmatprep.subr.bf16.mxu1 %v2099_v1  ;;  %1923 = vmatprep.mubr.msk.bf16.mxu0 %vm2100_vm0, %v2099_v1 }
  0x50   : > { %1943 = vmatprep.mubr.msk.bf16.mxu1 %vm2100_vm0, %v2099_v1 }
  0x51   : > { %1910 = vmatpush3.bf16.msra.mxu0 %v2053_v21 }
  0x52   : > { %1930 = vmatpush3.bf16.msra.mxu1 %v2054_v22  ;;  %1911 = vmatprep.subr.bf16.mxu0 %v2099_v1 }
  0x53   : > { %1931 = vmatprep.subr.bf16.mxu1 %v2099_v1 }
  0x55   : > { %1912 = vmatpush3.bf16.msra.mxu0 %v2055_v23 }
  0x56   : > { %1932 = vmatpush3.bf16.msra.mxu1 %v2056_v24  ;;  %1913 = vmatprep.subr.bf16.mxu0 %v2099_v1 }
  0x57   : > { %1933 = vmatprep.subr.bf16.mxu1 %v2099_v1 }
  0x59   : > { %1914 = vmatpush3.bf16.msra.mxu0 %v2057_v25 }
  0x5a   : > { %1934 = vmatpush3.bf16.msra.mxu1 %v2058_v26  ;;  %1915 = vmatprep.subr.bf16.mxu0 %v2099_v1 }
  0x5b   : > { %1935 = vmatprep.subr.bf16.mxu1 %v2099_v1 }
  0x5d   : > { %1916 = vmatpush3.bf16.msra.mxu0 %v2059_v27 }
  0x5e   : > { %1936 = vmatpush3.bf16.msra.mxu1 %v2060_v28  ;;  %1917 = vmatprep.subr.bf16.mxu0 %v2099_v1 }
  0x5f   : > { %1937 = vmatprep.subr.bf16.mxu1 %v2099_v1 }
  0x61   : > { %1918 = vmatpush3.bf16.msra.mxu0 %v2061_v29 }
  0x62   : > { %1938 = vmatpush3.bf16.msra.mxu1 %v2062_v30  ;;  %1919 = vmatprep.subr.bf16.mxu0 %v2099_v1  ;;  %v1678_v30 = vld [vmem:[%s2531_s4] ss:$0 sm:$0xff] }
  0x63   : > { %1939 = vmatprep.subr.bf16.mxu1 %v2099_v1 }
  0x65   : > { %1920 = vmatpush3.bf16.msra.mxu0 %v2063_v35 }
  0x66   : > { %1940 = vmatpush3.bf16.msra.mxu1 %v2064_v42  ;;  %1921 = vmatprep.subr.bf16.mxu0 %v2099_v1 }
  0x67   : > { %1941 = vmatprep.subr.bf16.mxu1 %v2099_v1 }
  0x69   : > { %1922 = vmatpush3.bf16.msra.mxu0 %v2065_v37 }
  0x6a   : > { %1942 = vmatpush3.bf16.msra.mxu1 %v2066_v50  ;;  %1947 = vmatprep.subr.bf16.mxu0 %v2099_v1 }
  0x6b   : > { %1967 = vmatprep.subr.bf16.mxu1 %v2099_v1 }
  0x6c   : > { %1924 = vmatmul.mubr.bf16.vlgmr.msra.gmra.mxu0 %v1642_v48 }
  0x6d   : > { %1944 = vmatmul.mubr.bf16.vlgmr.msra.gmra.mxu1 %v1669_v52  ;;  %1963 = vmatprep.mubr.msk.bf16.mxu0 %vm2100_vm0, %v2099_v1 }
  0x6e   : > { %1983 = vmatprep.mubr.msk.bf16.mxu1 %vm2100_vm0, %v2099_v1  ;;  %1948 = vmatpush3.bf16.msra.mxu0 %v2067_v53  ;;  %v2083_v53 = vld [vmem:[%s2532_s5 + $0xb0] sm:$0xff]  }
  0x6f   : > { %1949 = vmatprep.subr.bf16.mxu0 %v2099_v1  ;;  %1968 = vmatpush3.bf16.msra.mxu1 %v2070_v54 }
  0x70   : > { %1969 = vmatprep.subr.bf16.mxu1 %v2099_v1 }
  0x72   : > { %1950 = vmatpush3.bf16.msra.mxu0 %v2068_v55 }
  0x73   : > { %1951 = vmatprep.subr.bf16.mxu0 %v2099_v1  ;;  %1970 = vmatpush3.bf16.msra.mxu1 %v2072_v56 }
  0x74   : > { %1971 = vmatprep.subr.bf16.mxu1 %v2099_v1 }
  0x76   : > { %1952 = vmatpush3.bf16.msra.mxu0 %v2069_v57 }
  0x77   : > { %1953 = vmatprep.subr.bf16.mxu0 %v2099_v1  ;;  %1972 = vmatpush3.bf16.msra.mxu1 %v2074_v60 }
  0x78   : > { %1973 = vmatprep.subr.bf16.mxu1 %v2099_v1 }
  0x7a   : > { %1954 = vmatpush3.bf16.msra.mxu0 %v2071_v58  ;;  %v2085_v58 = vld [vmem:[%s2532_s5 + $0xa8] sm:$0xff]  }
  0x7b   : > { %1955 = vmatprep.subr.bf16.mxu0 %v2099_v1  ;;  %1974 = vmatpush3.bf16.msra.mxu1 %v2076_v62  ;;  %v2086_v62 = vld [vmem:[%s2532_s5 + $0xa0] sm:$0xff]  }
  0x7c   : > { %1975 = vmatprep.subr.bf16.mxu1 %v2099_v1 }
  0x7e   : > { %1956 = vmatpush3.bf16.msra.mxu0 %v2073_v59 }
  0x7f   : > { %1957 = vmatprep.subr.bf16.mxu0 %v2099_v1  ;;  %1976 = vmatpush3.bf16.msra.mxu1 %v2078_v0  ;;  %v2088_v0 = vld [vmem:[%s2532_s5 + $0x90] sm:$0xff]  }
  0x80   : > { %1977 = vmatprep.subr.bf16.mxu1 %v2099_v1 }
  0x82   : > { %1958 = vmatpush3.bf16.msra.mxu0 %v2075_v61 }
  0x83   : > { %1959 = vmatprep.subr.bf16.mxu0 %v2099_v1  ;;  %1978 = vmatpush3.bf16.msra.mxu1 %v2080_v3 }
  0x84   : > { %1979 = vmatprep.subr.bf16.mxu1 %v2099_v1 }
  0x86   : > { %1960 = vmatpush3.bf16.msra.mxu0 %v2077_v63  ;;  %v2087_v63 = vld [vmem:[%s2532_s5 + $0x98] sm:$0xff]  }
  0x87   : > { %1961 = vmatprep.subr.bf16.mxu0 %v2099_v1  ;;  %1980 = vmatpush3.bf16.msra.mxu1 %v2082_v4  ;;  %v2089_v4 = vld [vmem:[%s2532_s5 + $0x88] sm:$0xff]  }
  0x88   : > { %1981 = vmatprep.subr.bf16.mxu1 %v2099_v1 }
  0x8a   : > { %1962 = vmatpush3.bf16.msra.mxu0 %v2079_v2 }
  0x8b   : > { %1987 = vmatprep.subr.bf16.mxu0 %v2099_v1  ;;  %1982 = vmatpush3.bf16.msra.mxu1 %v2084_v5 }
  0xec   : > { %v435_v6 = vpop.f32.mrf.mxu0 }
  0xed   : > { %v530_v7 = vpop.f32.mrf.mxu1 }
  0xee   : > { %v1845_v8 = vpop.f32.mrf.mxu0  ;;  %v531_v22 = vadd.f32 %v530_v7, %v435_v6  ;;  %v2090_v7 = vld [vmem:[%s2532_s5 + $0x80] sm:$0xff]  }
  0xef   : > { %v1865_v9 = vpop.f32.mrf.mxu1 }
  0xf0   : > { %v438_v10 = vpop.f32.mrf.mxu0 }
  0xf1   : > { %v533_v11 = vpop.f32.mrf.mxu1 }
  0xf2   : > { %v1846_v12 = vpop.f32.mrf.mxu0  ;;  %v534_v24 = vadd.f32 %v533_v11, %v438_v10 }
  0xf3   : > { %v1866_v13 = vpop.f32.mrf.mxu1 }
 0x10c   : > { %v675_v14 = vpop.f32.mrf.mxu0 }
 0x10d   : > { %v819_v15 = vpop.f32.mrf.mxu1  ;;  %v682_v23 = vadd.f32 %v675_v14, %v531_v22 }
 0x10e   : > { %v1885_v16 = vpop.f32.mrf.mxu0 }
 0x10f   : > { %v1905_v17 = vpop.f32.mrf.mxu1  ;;  %v826_v25 = vadd.f32 %v819_v15, %v682_v23 }
 0x110   : > { %v678_v18 = vpop.f32.mrf.mxu0 }
 0x111   : > { %v822_v19 = vpop.f32.mrf.mxu1  ;;  %v683_v26 = vadd.f32 %v678_v18, %v534_v24 }
 0x112   : > { %v1886_v20 = vpop.f32.mrf.mxu0 }
 0x113   : > { %v1906_v21 = vpop.f32.mrf.mxu1  ;;  %v827_v32 = vadd.f32 %v822_v19, %v683_v26 }
 0x12c   : > { %v948_v27 = vpop.f32.mrf.mxu0 }
 0x12d   : > { %v955_v28 = vadd.f32 %v948_v27, %v826_v25  ;;  %v1074_v29 = vpop.f32.mrf.mxu1 }
 0x12e   : > { %v1925_v31 = vpop.f32.mrf.mxu0 }
 0x12f   : > { %v1081_v33 = vadd.f32 %v1074_v29, %v955_v28  ;;  %v1945_v34 = vpop.f32.mrf.mxu1 }
 0x130   : > { %v951_v35 = vpop.f32.mrf.mxu0 }
 0x131   : > { %v1090_v36 = vadd.f32 %v1678_v30, %v1081_v33  ;;  %v956_v39 = vadd.f32 %v951_v35, %v827_v32  ;;  %v1077_v40 = vpop.f32.mrf.mxu1 }
 0x132   : > { %v1926_v41 = vpop.f32.mrf.mxu0 }
 0x133   : > { %v1092_v42 = vmax.f32 %v1090_v36, 0.0  ;;  %v1082_v43 = vadd.f32 %v1077_v40, %v956_v39  ;;  %v1946_v45 = vpop.f32.mrf.mxu1 }
 0x135   : > { %v1744_v46 = vpack.c.bf16 %v1092_v42, %v1092_v42  ;;  %v1091_v47 = vadd.f32 %v1678_v30, %v1082_v43 }
 0x137   : > { %v1101_v37 = vshrl.u32 %v1744_v46, 16  ;;  %v1093_v38 = vmax.f32 %v1091_v47, 0.0  ;;  %v1104_v48 = vshll.u32 %v1744_v46, 16 }
 0x139   : > { %v1103_v50 = vrot.slane %v1101_v37, 7  ;;  %v1094_v44 = vpack.c.bf16 %v1093_v38, %v1092_v42  ;;  %v1745_v51 = vpack.c.bf16 %v1093_v38, %v1093_v38  ;;  %v1121_v3 = vrot.slane %v1104_v48, 1 }
 0x13b   : > { %v1108_v52 = vshrl.u32 %v1745_v51, 16  ;;  %1964 = vmatmul.mubr.bf16.vlgmr.msra.gmra.mxu0 %v1094_v44  ;;  %v1106_v54 = vor.u32 %v1104_v48, %v1103_v50  ;;  %v1111_v56 = vshll.u32 %v1745_v51, 16  ;;  %v1122_v6 = vor.u32 %v1121_v3, %v1101_v37 }
 0x13c   : > { %1988 = vmatpush3.bf16.msra.mxu0 %v2081_v49  ;;  %2003 = vmatprep.mubr.msk.bf16.mxu0 %vm2100_vm0, %v2099_v1 }
 0x13d   : > { %v1110_v55 = vrot.slane %v1108_v52, 7  ;;  %1989 = vmatprep.subr.bf16.mxu0 %v2099_v1  ;;  %v1119_v59 = vsel %vm1118_vm9, 0, %v1106_v54  ;;  %v1123_v2 = vrot.slane %v1111_v56, 1  ;;  %v1129_v9 = vsel %vm1128_vm11, %v1122_v6, 0 }
 0x13f   : > { %v1113_v57 = vor.u32 %v1111_v56, %v1110_v55  ;;  %v1124_v5 = vor.u32 %v1123_v2, %v1108_v52 }
 0x140   : > { %1990 = vmatpush3.bf16.msra.mxu0 %v2083_v53 }
 0x141   : > { %1991 = vmatprep.subr.bf16.mxu0 %v2099_v1  ;;  %v1120_v60 = vsel %vm1118_vm9, 0, %v1113_v57  ;;  %v1130_v8 = vsel %vm1128_vm11, %v1124_v5, 0 }
 0x142   : > { %v1705_v61 = vcombine.low %v1119_v59, %v1120_v60  ;;  %v1730_v10 = vcombine.low %v1129_v9, %v1130_v8 }
 0x144   : > { %1992 = vmatpush3.bf16.msra.mxu0 %v2085_v58  ;;  %1984 = vmatmul.mubr.bf16.vlgmr.msra.gmra.mxu1 %v1705_v61 }
 0x145   : > { %1993 = vmatprep.subr.bf16.mxu0 %v2099_v1 }
 0x148   : > { %1994 = vmatpush3.bf16.msra.mxu0 %v2086_v62 }
 0x149   : > { %1995 = vmatprep.subr.bf16.mxu0 %v2099_v1 }
 0x14c   : > { %1996 = vmatpush3.bf16.msra.mxu0 %v2087_v63 }
 0x14d   : > { %1997 = vmatprep.subr.bf16.mxu0 %v2099_v1 }
 0x150   : > { %1998 = vmatpush3.bf16.msra.mxu0 %v2088_v0 }
 0x151   : > { %1999 = vmatprep.subr.bf16.mxu0 %v2099_v1 }
 0x154   : > { %2000 = vmatpush3.bf16.msra.mxu0 %v2089_v4 }
 0x155   : > { %2001 = vmatprep.subr.bf16.mxu0 %v2099_v1  ;;  %v1739_v1 = vld [vmem:[%s2533_s6] ss:$0 sm:$0xff] }
 0x158   : > { %2002 = vmatpush3.bf16.msra.mxu0 %v2090_v7 }
 0x15b   : > { %2004 = vmatmul.mubr.bf16.vlgmr.msra.gmra.mxu0 %v1730_v10 }
 0x1fb   : > { %v1246_v11 = vpop.f32.mrf.mxu0 }
 0x1fd   : > { %v1965_v12 = vpop.f32.mrf.mxu0 }
 0x1ff   : > { %v1249_v13 = vpop.f32.mrf.mxu0 }
 0x201   : > { %v1966_v14 = vpop.f32.mrf.mxu0 }
 0x204   : > { %v1341_v15 = vpop.f32.mrf.mxu1 }
 0x205   : > { %v1342_v19 = vadd.f32 %v1341_v15, %v1246_v11 }
 0x206   : > { %v1985_v16 = vpop.f32.mrf.mxu1 }
 0x208   : > { %v1344_v17 = vpop.f32.mrf.mxu1 }
 0x209   : > { %v1345_v23 = vadd.f32 %v1344_v17, %v1249_v13 }
 0x20a   : > { %v1986_v18 = vpop.f32.mrf.mxu1 }
 0x21b   : > { %v1453_v20 = vpop.f32.mrf.mxu0 }
 0x21c   : > { %v1460_v21 = vadd.f32 %v1453_v20, %v1342_v19 }
 0x21d   : > { %v2005_v22 = vpop.f32.mrf.mxu0 }
 0x21e   : > { %v1469_v24 = vadd.f32 %v1739_v1, %v1460_v21 }
 0x21f   : > { %v1456_v25 = vpop.f32.mrf.mxu0 }
 0x220   : > { %v1471_v26 = vmax.f32 %v1469_v24, 0.0  ;;  %v1461_v27 = vadd.f32 %v1456_v25, %v1345_v23 }
 0x221   : > { %v2006_v28 = vpop.f32.mrf.mxu0 }
 0x222   : > { %1473 = vst [vmem:[%s308_s19] sm:$0xff] %v1471_v26  ;;  %v1470_v29 = vadd.f32 %v1739_v1, %v1461_v27 }
 0x224   : > { %v1472_v30 = vmax.f32 %v1470_v29, 0.0 }
 0x226   : > { %1474 = vst [vmem:[%s308_s19 + $0x8] sm:$0xff] %v1472_v30 }
 0x227 PF: > { %s17_s24 = sadd.s32 1, %s2097_s24  }
 0x228   : > { %p14_p4 = scmp.ge.s32.totalorder %s17_s24, 4  }
 0x22a   :  { %16 = sbr.rel (!%p14_p4) target bundleno = 1 (0x1), region = 87 }

</bundles_post_ra>
